<compile_context>
chip_gen: v6e
topology: v6e:2x2x1
jax: 0.10.0
libtpu: 0.0.40
codegen_flags: <defaults>
</compile_context>

<pallas_src>
import functools

import jax
import jax.numpy as jnp
from jax.experimental import pallas as pl
from jax.experimental.pallas import tpu as pltpu


def _round_up(x, m):
    return (x + m - 1) // m * m


def _itemsize(dt):
    return jnp.dtype(dt).itemsize


# Plan against the 32 MiB scoped VMEM limit (v7x only has 64 MiB physical), with
# headroom for compiler temporaries.
_VMEM_LIMIT = 32 * 1024 * 1024
_VMEM_BUDGET = 24 * 1024 * 1024


def _single_buffered_spec(block_shape, index_map):
    """BlockSpec for a block whose index never changes across the grid: request
    single-buffering so it is DMA'd once and held resident (no double buffer)."""
    buffered = getattr(pl, "Buffered", None)
    if buffered is not None:
        try:
            return pl.BlockSpec(block_shape, index_map, pipeline_mode=buffered(1))
        except (TypeError, ValueError):
            pass
    return pl.BlockSpec(block_shape, index_map)


# ------------------------- LayerNormalization (custom) --------------------------
# alpha * (x - mean) / (std + eps) + bias with scalar alpha/bias and *unbiased* std
# over the last dim (matches the custom PyTorch module, NOT nn.LayerNorm).

def _layernorm_rows(y, alpha, bias, eps):
    n = y.shape[-1]
    mean = jnp.sum(y, axis=-1, keepdims=True) * (1.0 / n)
    d = y - mean
    var = jnp.sum(d * d, axis=-1, keepdims=True) * (1.0 / (n - 1))
    t = jnp.sqrt(var) + eps
    inv = pl.reciprocal(t, approx=True)   # EUP slot (effectively free)
    inv = inv * (2.0 - t * inv)           # one Newton step -> ~f32-exact
    return alpha * (d * inv) + bias


def _layernorm_kernel(x_ref, a_ref, b_ref, o_ref, *, eps):
    y = _layernorm_rows(x_ref[...].astype(jnp.float32), a_ref[...], b_ref[...], eps)
    o_ref[...] = y.astype(o_ref.dtype)


@functools.partial(jax.jit, static_argnames=("eps", "tm"))
def layer_normalization(x, alpha, bias, *, eps=1e-6, tm=512):
    orig_shape = x.shape
    d = x.shape[-1]
    M = x.size // d
    x2d = x.reshape(M, d)

    tm_eff = min(tm, _round_up(M, 8))
    if M > 8 and pl.cdiv(M, tm_eff) < 2:      # give v7x's 2 TCs >= 2 row tiles
        tm_eff = max(8, _round_up(pl.cdiv(M, 2), 8))
    M_pad = _round_up(M, tm_eff)
    if M_pad != M:
        x2d = jnp.pad(x2d, ((0, M_pad - M), (0, 0)))

    a2 = jnp.asarray(alpha, jnp.float32).reshape(1, 1)
    b2 = jnp.asarray(bias, jnp.float32).reshape(1, 1)

    out2d = pl.pallas_call(
        functools.partial(_layernorm_kernel, eps=eps),
        out_shape=jax.ShapeDtypeStruct((M_pad, d), x.dtype),
        grid_spec=pltpu.PrefetchScalarGridSpec(
            num_scalar_prefetch=0,
            grid=(M_pad // tm_eff,),
            in_specs=[
                pl.BlockSpec((tm_eff, d), lambda i: (i, 0)),
                pl.BlockSpec((1, 1), lambda i: (0, 0)),
                pl.BlockSpec((1, 1), lambda i: (0, 0)),
            ],
            out_specs=pl.BlockSpec((tm_eff, d), lambda i: (i, 0)),
        ),
        compiler_params=pltpu.CompilerParams(
            dimension_semantics=("parallel",),
            vmem_limit_bytes=_VMEM_LIMIT),
    )(x2d, a2, b2)
    return out2d[:M].reshape(orig_shape)


# ----------------------- fused feed-forward "layer" kernels ----------------------

def _ffn_resident_kernel(x_ref, w1_ref, b1_ref, w2_ref, b2_ref, a_ref, g_ref,
                         o_ref, *, apply_ln, eps):
    # Full W1/W2 resident in VMEM (DMA'd once); no reduction grid axis.
    x = x_ref[...].astype(w1_ref.dtype)        # no-op: wrapper already cast x
    h = jnp.dot(x, w1_ref[...], preferred_element_type=jnp.float32)
    h = jnp.maximum(h + b1_ref[...].astype(jnp.float32), 0.0)   # ReLU
    # TODO(synk): dropout is identity (eval mode); training would mask via
    # pltpu.prng_seed / pltpu.prng_random_bits.
    y = jnp.dot(h.astype(w2_ref.dtype), w2_ref[...],
                preferred_element_type=jnp.float32)
    y = y + b2_ref[...].astype(jnp.float32)
    if apply_ln:                               # fused final LayerNormalization
        y = _layernorm_rows(y, a_ref[...], g_ref[...], eps)
    o_ref[...] = y.astype(o_ref.dtype)


def _ffn_stream_kernel(*refs, apply_ln, eps, acc_in_out):
    # Grid: (row tiles i, d_ff chunks k); output/accumulator resident across k.
    if acc_in_out:
        x_ref, w1_ref, b1_ref, w2_ref, b2_ref, a_ref, g_ref, o_ref = refs
        acc_ref = o_ref                        # f32 output doubles as accumulator
    else:
        x_ref, w1_ref, b1_ref, w2_ref, b2_ref, a_ref, g_ref, o_ref, acc_ref = refs
    k = pl.program_id(1)

    @pl.when(k == 0)
    def _init():                               # fuse second-linear bias into init
        acc_ref[...] = jnp.broadcast_to(
            b2_ref[...].astype(acc_ref.dtype), acc_ref.shape)

    x = x_ref[...].astype(w1_ref.dtype)
    h = jnp.dot(x, w1_ref[...], preferred_element_type=jnp.float32)
    h = jnp.maximum(h + b1_ref[...].astype(jnp.float32), 0.0)   # ReLU
    acc_ref[...] += jnp.dot(h.astype(w2_ref.dtype), w2_ref[...],
                            preferred_element_type=jnp.float32).astype(acc_ref.dtype)

    if apply_ln or not acc_in_out:
        @pl.when(k == pl.num_programs(1) - 1)
        def _finalize():
            y = acc_ref[...].astype(jnp.float32)
            if apply_ln:
                y = _layernorm_rows(y, a_ref[...], g_ref[...], eps)
            o_ref[...] = y.astype(o_ref.dtype)


@functools.partial(jax.jit, static_argnames=("tm", "tk", "param_dtype", "apply_ln",
                                             "eps", "force_stream"))
def feed_forward_block(x, w1, b1, w2, b2, ln_alpha=None, ln_bias=None, *,
                       tm=512, tk=512, param_dtype=jnp.bfloat16,
                       apply_ln=False, eps=1e-6, force_stream=False):
    """linear2(dropout(relu(linear1(x)))) with optional fused final LayerNorm.
    Weights stored (in, out): kernel computes x @ W (== torch x @ W.T).
    param_dtype=jnp.bfloat16 (default) casts x/W1/W2 to bf16 with f32 accumulation;
    pass param_dtype=None to keep input dtypes."""
    orig_shape = x.shape
    out_dtype = x.dtype
    d_model = x.shape[-1]
    d_ff = w1.shape[1]
    M = x.size // d_model
    x2d = x.reshape(M, d_model)

    if param_dtype is not None:                # cast once in the wrapper
        x2d = x2d.astype(param_dtype)
        w1 = w1.astype(param_dtype)
        w2 = w2.astype(param_dtype)

    b1r = b1.reshape(1, d_ff).astype(jnp.float32)
    b2r = b2.reshape(1, d_model).astype(jnp.float32)
    a2 = jnp.asarray(1.0 if ln_alpha is None else ln_alpha, jnp.float32).reshape(1, 1)
    g2 = jnp.asarray(0.0 if ln_bias is None else ln_bias, jnp.float32).reshape(1, 1)

    x_it, w_it, o_it = _itemsize(x2d.dtype), _itemsize(w1.dtype), _itemsize(out_dtype)

    # Row tile: as big as possible, but keep >= 2 tiles so both v7x TCs get work.
    tm_eff = min(tm, _round_up(M, 8))
    if M > 8 and pl.cdiv(M, tm_eff) < 2:
        tm_eff = max(8, _round_up(pl.cdiv(M, 2), 8))

    # ---------------- path selection: resident weights vs streamed d_ff ----------
    w_bytes = 2 * d_model * d_ff * w_it

    def _resident_need(t):
        return (w_bytes + 4 * d_ff + 4 * d_model          # weights + biases
                + 2 * t * d_model * (x_it + o_it)         # x/out double-buffered
                + t * d_ff * (4 + w_it)                    # f32 h + cast copy
                + t * d_model * 4)                         # matmul result staging

    resident_tm = None
    if not force_stream:
        for t in [tm_eff] + [c for c in (256, 128) if c < tm_eff]:
            if _resident_need(t) <= _VMEM_BUDGET:
                resident_tm = t
                break

    if resident_tm is not None:
        tm_eff = resident_tm
        M_pad = _round_up(M, tm_eff)
        if M_pad != M:
            x2d = jnp.pad(x2d, ((0, M_pad - M), (0, 0)))

        flops = 4 * M_pad * d_model * d_ff
        bytes_accessed = (M_pad * d_model * (x_it + o_it) + w_bytes
                          + 4 * (d_ff + d_model))
        out2d = pl.pallas_call(
            functools.partial(_ffn_resident_kernel, apply_ln=apply_ln, eps=eps),
            out_shape=jax.ShapeDtypeStruct((M_pad, d_model), out_dtype),
            grid_spec=pltpu.PrefetchScalarGridSpec(
                num_scalar_prefetch=0,
                grid=(M_pad // tm_eff,),
                in_specs=[
                    pl.BlockSpec((tm_eff, d_model), lambda i: (i, 0)),          # x
                    _single_buffered_spec((d_model, d_ff), lambda i: (0, 0)),   # W1
                    _single_buffered_spec((1, d_ff), lambda i: (0, 0)),         # b1
                    _single_buffered_spec((d_ff, d_model), lambda i: (0, 0)),   # W2
                    pl.BlockSpec((1, d_model), lambda i: (0, 0)),               # b2
                    pl.BlockSpec((1, 1), lambda i: (0, 0)),                     # alpha
                    pl.BlockSpec((1, 1), lambda i: (0, 0)),                     # bias
                ],
                out_specs=pl.BlockSpec((tm_eff, d_model), lambda i: (i, 0)),
            ),
            compiler_params=pltpu.CompilerParams(
                dimension_semantics=("parallel",),
                vmem_limit_bytes=_VMEM_LIMIT),
            cost_estimate=pl.CostEstimate(flops=flops, transcendentals=0,
                                          bytes_accessed=bytes_accessed),
        )(x2d, w1, b1r, w2, b2r, a2, g2)
        return out2d[:M].reshape(orig_shape)

    # ------------- streaming fallback: trailing "arbitrary" d_ff reduction -------
    tk_eff = None
    cand = min((tk // 128) * 128, (d_ff // 128) * 128)
    while cand >= 128:
        if d_ff % cand == 0:
            tk_eff = cand
            break
        cand -= 128
    if tk_eff is None:
        # No multiple-of-128 divisor: zero-pad d_ff (exact: relu(0 + 0) = 0).
        tk_eff = max(128, min((tk // 128) * 128, _round_up(d_ff, 128)))
        d_ff_pad = _round_up(d_ff, tk_eff)
        w1 = jnp.pad(w1, ((0, 0), (0, d_ff_pad - d_ff)))
        b1r = jnp.pad(b1r, ((0, 0), (0, d_ff_pad - d_ff)))
        w2 = jnp.pad(w2, ((0, d_ff_pad - d_ff), (0, 0)))
        d_ff = d_ff_pad

    acc_in_out = jnp.dtype(out_dtype) == jnp.dtype(jnp.float32)

    def _stream_need(t):
        return (2 * 2 * d_model * tk_eff * w_it + 4 * tk_eff + 4 * d_model
                + 2 * t * d_model * (x_it + o_it)
                + t * tk_eff * (4 + w_it)
                + t * d_model * 4 * (1 if acc_in_out else 2))

    while tm_eff > 128 and _stream_need(tm_eff) > _VMEM_BUDGET:
        tm_eff = max(128, _round_up(tm_eff // 2, 8))

    M_pad = _round_up(M, tm_eff)
    if M_pad != M:
        x2d = jnp.pad(x2d, ((0, M_pad - M), (0, 0)))

    nk = d_ff // tk_eff
    flops = 4 * M_pad * d_model * d_ff
    bytes_accessed = (M_pad * d_model * (x_it + o_it)
                      + (M_pad // tm_eff) * 2 * d_model * d_ff * w_it
                      + 4 * (d_ff + d_model))

    scratch = [] if acc_in_out else [pltpu.VMEM((tm_eff, d_model), jnp.float32)]
    out2d = pl.pallas_call(
        functools.partial(_ffn_stream_kernel, apply_ln=apply_ln, eps=eps,
                          acc_in_out=acc_in_out),
        out_shape=jax.ShapeDtypeStruct((M_pad, d_model), out_dtype),
        grid_spec=pltpu.PrefetchScalarGridSpec(
            num_scalar_prefetch=0,
            grid=(M_pad // tm_eff, nk),
            in_specs=[
                pl.BlockSpec((tm_eff, d_model), lambda i, k: (i, 0)),   # x rows
                pl.BlockSpec((d_model, tk_eff), lambda i, k: (0, k)),   # W1 chunk
                pl.BlockSpec((1, tk_eff), lambda i, k: (0, k)),         # b1 chunk
                pl.BlockSpec((tk_eff, d_model), lambda i, k: (k, 0)),   # W2 chunk
                pl.BlockSpec((1, d_model), lambda i, k: (0, 0)),        # b2
                pl.BlockSpec((1, 1), lambda i, k: (0, 0)),              # alpha
                pl.BlockSpec((1, 1), lambda i, k: (0, 0)),              # bias
            ],
            out_specs=pl.BlockSpec((tm_eff, d_model), lambda i, k: (i, 0)),
            scratch_shapes=scratch,
        ),
        compiler_params=pltpu.CompilerParams(
            dimension_semantics=("parallel", "arbitrary"),
            vmem_limit_bytes=_VMEM_LIMIT),
        cost_estimate=pl.CostEstimate(flops=flops, transcendentals=0,
                                      bytes_accessed=bytes_accessed),
    )(x2d, w1, b1r, w2, b2r, a2, g2)
    return out2d[:M].reshape(orig_shape)


# ----------------------------------- Encoder -----------------------------------

def encoder_forward(x, mask, layer_params, ln_alpha, ln_bias, *,
                    eps=1e-6, param_dtype=jnp.bfloat16):
    # TODO(synk): the reference Encoder wraps an arbitrary nn.ModuleList whose
    # EncoderBlock internals (self-attention + residuals) are not in the provided
    # source; each layer here is the fused feed-forward block and `mask` is unused.
    del mask
    if not layer_params:
        return layer_normalization(x, ln_alpha, ln_bias, eps=eps)
    last = len(layer_params) - 1
    for li, (w1, b1, w2, b2) in enumerate(layer_params):
        x = feed_forward_block(
            x, w1, b1, w2, b2,
            ln_alpha if li == last else None,
            ln_bias if li == last else None,
            apply_ln=(li == last), eps=eps, param_dtype=param_dtype)
    return x


if __name__ == "__main__":
    batch, seq, d_model, d_ff, n_layers = 2, 8, 32, 64, 2
    eps = 1e-6

    key = jax.random.PRNGKey(0)
    keys = jax.random.split(key, 1 + 4 * n_layers)
    x = jax.random.normal(keys[0], (batch, seq, d_model), dtype=jnp.float32)

    layer_params = []
    for l in range(n_layers):
        kw1, kb1, kw2, kb2 = keys[1 + 4 * l: 1 + 4 * (l + 1)]
        layer_params.append((
            jax.random.normal(kw1, (d_model, d_ff), jnp.float32) * 0.05,
            jax.random.normal(kb1, (d_ff,), jnp.float32) * 0.05,
            jax.random.normal(kw2, (d_ff, d_model), jnp.float32) * 0.05,
            jax.random.normal(kb2, (d_model,), jnp.float32) * 0.05,
        ))

    ln_alpha = jnp.full((1,), 1.5, jnp.float32)
    ln_bias = jnp.full((1,), -0.25, jnp.float32)

    # Pure-JAX reference (same semantics as the PyTorch forward in eval mode).
    def ref_ffn(v, p):
        w1, b1, w2, b2 = p
        return jnp.maximum(v @ w1 + b1, 0.0) @ w2 + b2

    def ref_ln(v):
        mean = v.mean(-1, keepdims=True)
        std = jnp.sqrt(((v - mean) ** 2).sum(-1, keepdims=True) / (v.shape[-1] - 1))
        return ln_alpha * ((v - mean) / (std + eps)) + ln_bias

    ref = x
    for p in layer_params:
        ref = ref_ffn(ref, p)
    ref_out = ref_ln(ref)

    # 1) f32 weights: resident-weight path + fused final LayerNorm.
    out_f32 = jax.block_until_ready(
        encoder_forward(x, None, layer_params, ln_alpha, ln_bias,
                        eps=eps, param_dtype=None))
    assert out_f32.shape == x.shape
    assert jnp.allclose(out_f32, ref_out, atol=5e-3, rtol=5e-3), "f32 encoder mismatch"

    # 2) default bf16 weight/activation fast path (f32 MXU accumulation).
    out_bf16 = jax.block_until_ready(
        encoder_forward(x, None, layer_params, ln_alpha, ln_bias, eps=eps))
    assert jnp.allclose(out_bf16, ref_out, atol=3e-2, rtol=3e-2), "bf16 encoder mismatch"

    # 3) streaming (k-tiled) fallback, f32 accumulate-directly-into-output path.
    skeys = jax.random.split(keys[-1], 4)
    w1s = jax.random.normal(skeys[0], (d_model, 256), jnp.float32) * 0.05
    b1s = jax.random.normal(skeys[1], (256,), jnp.float32) * 0.05
    w2s = jax.random.normal(skeys[2], (256, d_model), jnp.float32) * 0.05
    b2s = jax.random.normal(skeys[3], (d_model,), jnp.float32) * 0.05
    out_stream = jax.block_until_ready(
        feed_forward_block(x, w1s, b1s, w2s, b2s, param_dtype=None,
                           force_stream=True, tk=128))
    ref_stream = ref_ffn(x, (w1s, b1s, w2s, b2s))
    assert jnp.allclose(out_stream, ref_stream, atol=2e-3, rtol=2e-3), "stream mismatch"

    # 4) streaming with non-f32 output dtype (exercises the scratch accumulator).
    out_stream_bf16 = jax.block_until_ready(
        feed_forward_block(x.astype(jnp.bfloat16), w1s, b1s, w2s, b2s,
                           param_dtype=None, force_stream=True, tk=128))
    assert jnp.allclose(out_stream_bf16.astype(jnp.float32), ref_stream,
                        atol=2e-2, rtol=2e-2), "stream bf16 mismatch"

    # 5) standalone LayerNormalization kernel (used when the layer list is empty).
    out_ln = jax.block_until_ready(layer_normalization(x, ln_alpha, ln_bias, eps=eps))
    assert jnp.allclose(out_ln, ref_ln(x), atol=2e-3, rtol=2e-3), "layernorm mismatch"

    print("KERNEL_OK")
</pallas_src>

<mosaic_0001>
module attributes {stable_mosaic.version = 11 : i64} {
  func.func @_ffn_resident_kernel(%arg0: i32, %arg1: memref<8x32xf32, #tpu.memory_space<vmem>>, %arg2: memref<32x64xf32, #tpu.memory_space<vmem>>, %arg3: memref<1x64xf32, #tpu.memory_space<vmem>>, %arg4: memref<64x32xf32, #tpu.memory_space<vmem>>, %arg5: memref<1x32xf32, #tpu.memory_space<vmem>>, %arg6: memref<1x1xf32, #tpu.memory_space<vmem>>, %arg7: memref<1x1xf32, #tpu.memory_space<vmem>>, %arg8: memref<8x32xf32, #tpu.memory_space<vmem>>) attributes {dimension_semantics = [#tpu.dimension_semantics<parallel>], iteration_bounds = array<i64: 2>, scalar_prefetch = 0 : i64, scratch_operands = 0 : i64, tpu.core_type = #tpu.core_type<tc>, window_params = [{transform_indices = @transform_0, window_bounds = array<i64: 8, 32>}, {pipeline_mode = #tpu.pipeline_mode<synchronous>, transform_indices = @transform_1, window_bounds = array<i64: 32, 64>}, {pipeline_mode = #tpu.pipeline_mode<synchronous>, transform_indices = @transform_2, window_bounds = array<i64: 1, 64>}, {pipeline_mode = #tpu.pipeline_mode<synchronous>, transform_indices = @transform_3, window_bounds = array<i64: 64, 32>}, {pipeline_mode = #tpu.pipeline_mode<synchronous>, transform_indices = @transform_4, window_bounds = array<i64: 1, 32>}, {pipeline_mode = #tpu.pipeline_mode<synchronous>, transform_indices = @transform_5, window_bounds = array<i64: 1, 1>}, {pipeline_mode = #tpu.pipeline_mode<synchronous>, transform_indices = @transform_6, window_bounds = array<i64: 1, 1>}, {transform_indices = @transform_7, window_bounds = array<i64: 8, 32>}]} {
    %c0 = arith.constant 0 : index
    %c0_0 = arith.constant 0 : index
    %0 = vector.load %arg1[%c0, %c0_0] : memref<8x32xf32, #tpu.memory_space<vmem>>, vector<8x32xf32>
    %c0_1 = arith.constant 0 : index
    %c0_2 = arith.constant 0 : index
    %1 = vector.load %arg2[%c0_1, %c0_2] : memref<32x64xf32, #tpu.memory_space<vmem>>, vector<32x64xf32>
    %cst = arith.constant dense<0.000000e+00> : vector<8x64xf32>
    %2 = tpu.matmul %0, %1, %cst {dimension_numbers = #tpu.dot_dimension_numbers<[1], [0], [0], [1], [0, 0, 1, 1], [], []>} : vector<8x32xf32>, vector<32x64xf32>, vector<8x64xf32> -> vector<8x64xf32>
    %c0_3 = arith.constant 0 : index
    %c0_4 = arith.constant 0 : index
    %3 = vector.load %arg3[%c0_3, %c0_4] : memref<1x64xf32, #tpu.memory_space<vmem>>, vector<1x64xf32>
    %4 = vector.broadcast %3 : vector<1x64xf32> to vector<8x64xf32>
    %5 = arith.addf %2, %4 : vector<8x64xf32>
    %cst_5 = arith.constant 0.000000e+00 : f32
    %6 = vector.broadcast %cst_5 : f32 to vector<8x64xf32>
    %7 = arith.maximumf %5, %6 : vector<8x64xf32>
    %c0_6 = arith.constant 0 : index
    %c0_7 = arith.constant 0 : index
    %8 = vector.load %arg4[%c0_6, %c0_7] : memref<64x32xf32, #tpu.memory_space<vmem>>, vector<64x32xf32>
    %cst_8 = arith.constant dense<0.000000e+00> : vector<8x32xf32>
    %9 = tpu.matmul %7, %8, %cst_8 {dimension_numbers = #tpu.dot_dimension_numbers<[1], [0], [0], [1], [0, 0, 1, 1], [], []>} : vector<8x64xf32>, vector<64x32xf32>, vector<8x32xf32> -> vector<8x32xf32>
    %c0_9 = arith.constant 0 : index
    %c0_10 = arith.constant 0 : index
    %10 = vector.load %arg5[%c0_9, %c0_10] : memref<1x32xf32, #tpu.memory_space<vmem>>, vector<1x32xf32>
    %11 = vector.broadcast %10 : vector<1x32xf32> to vector<8x32xf32>
    %12 = arith.addf %9, %11 : vector<8x32xf32>
    %c0_11 = arith.constant 0 : index
    %c0_12 = arith.constant 0 : index
    %13 = vector.load %arg8[%c0_11, %c0_12] : memref<8x32xf32, #tpu.memory_space<vmem>>, vector<8x32xf32>
    tpu.vector_store %arg8[%c0_11, %c0_12], %12 {strides = array<i32>} : memref<8x32xf32, #tpu.memory_space<vmem>>, vector<8x32xf32>,
    return
  }
  func.func @transform_0(%arg0: i32) -> (i32, i32) {
    %c0_i32 = arith.constant 0 : i32
    %c0_i32_0 = arith.constant 0 : i32
    return %arg0, %c0_i32 : i32, i32
  }
  func.func @transform_1(%arg0: i32) -> (i32, i32) {
    %c0_i32 = arith.constant 0 : i32
    %c0_i32_0 = arith.constant 0 : i32
    %c0_i32_1 = arith.constant 0 : i32
    return %c0_i32, %c0_i32_0 : i32, i32
  }
  func.func @transform_2(%arg0: i32) -> (i32, i32) {
    %c0_i32 = arith.constant 0 : i32
    %c0_i32_0 = arith.constant 0 : i32
    %c0_i32_1 = arith.constant 0 : i32
    return %c0_i32, %c0_i32_0 : i32, i32
  }
  func.func @transform_3(%arg0: i32) -> (i32, i32) {
    %c0_i32 = arith.constant 0 : i32
    %c0_i32_0 = arith.constant 0 : i32
    %c0_i32_1 = arith.constant 0 : i32
    return %c0_i32, %c0_i32_0 : i32, i32
  }
  func.func @transform_4(%arg0: i32) -> (i32, i32) {
    %c0_i32 = arith.constant 0 : i32
    %c0_i32_0 = arith.constant 0 : i32
    %c0_i32_1 = arith.constant 0 : i32
    return %c0_i32, %c0_i32_0 : i32, i32
  }
  func.func @transform_5(%arg0: i32) -> (i32, i32) {
    %c0_i32 = arith.constant 0 : i32
    %c0_i32_0 = arith.constant 0 : i32
    %c0_i32_1 = arith.constant 0 : i32
    return %c0_i32, %c0_i32_0 : i32, i32
  }
  func.func @transform_6(%arg0: i32) -> (i32, i32) {
    %c0_i32 = arith.constant 0 : i32
    %c0_i32_0 = arith.constant 0 : i32
    %c0_i32_1 = arith.constant 0 : i32
    return %c0_i32, %c0_i32_0 : i32, i32
  }
  func.func @transform_7(%arg0: i32) -> (i32, i32) {
    %c0_i32 = arith.constant 0 : i32
    %c0_i32_0 = arith.constant 0 : i32
    return %arg0, %c0_i32 : i32, i32
  }
}

</mosaic_0001>

<bundles_post_ra>
// kernel: feed_forward_block.1
= control target key start
LH: loop header
LB: loop body
LE: loop exit
PB: predicated region body
PF: predicated region fallthrough
CT: control target
= control target key end

     0   :  { %16 = vsyncpa [#allocation5], 0  ;;  %s871_s0 = inlined_call_operand.vmem [shape: f32[16,32], index: 0, kind: input, shape index: {}]   ;;  %s872_s1 = inlined_call_operand.vmem [shape: f32[32,64], index: 1, kind: input, shape index: {}]   ;;  %s873_s2 = inlined_call_operand.vmem [shape: f32[1,64], index: 2, kind: input, shape index: {}]   ;;  %s874_s3 = inlined_call_operand.vmem [shape: f32[64,32], index: 3, kind: input, shape index: {}]   ;;  %s875_s4 = inlined_call_operand.vmem [shape: f32[1,32], index: 4, kind: input, shape index: {}]   ;;  %s876_s5 = inlined_call_operand.<no memory space> [shape: f32[1,1], index: 5, kind: input, shape index: {}]   ;;  %s877_s7 = inlined_call_operand.hbm [shape: f32[16,32], index: 7, kind: output, shape index: {}]   ;;  %s878_s6 = inlined_call_operand.<no memory space> [shape: f32[1,1], index: 6, kind: input, shape index: {}]  }
   0x1   :  { %18 = vsyncpa [#allocation5 + $0x1], 0  ;;  %s732_s24 = smov 0   ;;  %s734_s25 = smov 0  }
   0x2   :  { %s736_s26 = smov 0   ;;  %s738_s27 = smov 0  }
   0x3 LB: > { %s753_s5 = sadd.s32 4294967295, %s687_s27   ;;  %s528_s6 = sadd.s32 4294967294, %s687_s27   ;;  %s687_s27 = sphi %s738_s27, %s884_s27   ;;  %s683_s26 = sphi %s736_s26, %s883_s26   ;;  %s679_s25 = sphi %s734_s25, %s882_s25   ;;  %s675_s24 = sphi %s732_s24, %s881_s24  }
   0x4   : > { %s757_s28 = sadd.s32 1, %s687_s27   ;;  %s183_s29 = sadd.s32 1, %s683_s26 }
   0x5   : > { %s180_s30 = ssub.s32 %s687_s27, %s757_s28  ;;  %p193_p0 = scmp.ne.s32.totalorder %s683_s26, %s679_s25 }
   0x6   : > { %p181_p1 = scmp.eq.s32.totalorder %s180_s30, 0  ;;  %p194_p2 = scmp.eq.s32.totalorder %s753_s5, 1 }
   0x7   : > { %p199_p3 = scmp.ne.s32.totalorder %s679_s25, %s675_s24  ;;  %p200_p4 = scmp.eq.s32.totalorder %s528_s6, 1 }
   0x8   : > { %s768_s8 = scalar_select %p181_p1, %s683_s26, %s183_s29  }
   0x9   : > { %p770_p5 = por %p194_p2, %p193_p0  ;;  %p774_p6 = por %p200_p4, %p199_p3 }
   0xa   : > { %p531_p7 = scmp.ge.s32.totalorder %s687_s27, 1  ;;  %p243_p8 = scmp.lt.s32.totalorder %s687_s27, 3 }
   0xc   : > { %p244_p9 = pnand %p531_p7, %p243_p8 }
   0xd   : > { %p274_p10 = scmp.lt.s32.totalorder (!%p244_p9), %s753_s5, 1  ;;  %s271_s30 = sand.u32 (!%p244_p9), 1, %s679_s25  }
   0xe   : > { %247 = sbr.rel (%p244_p9) target bundleno = 433 (0x1b1), region = 48  ;;  %s532_s11 = sshll.u32 (!%p244_p9), %s271_s30, 3 }
   0xf   : > { %s539_s14 = sshll.u32 (!%p244_p9), %s753_s5, 7  ;;  %s273_s15 = scalar_lea.vmem (!%p244_p9), [#allocation4], %s532_s11 }
  0x10   : > { %s469_s16 = sshll.u32 (!%p244_p9), %s273_s15, 4  ;;  %s835_s19 = scalar_lea.hbm (!%p244_p9), %s877_s7, %s539_s14  ;;  %s470_s16 = int_to_ptr.vmem [resolvable:$true] %s469_s16 }
  0x11   : > { %s456_s20 = scalar_lea.sflag (!%p244_p9), [#allocation5], %s271_s30  ;;  %s627_s21 = scalar_lea.vmem (!%p244_p9), %s470_s16, 128 }
  0x12   : > { %p628_p11 = scmp.ne.s32.totalorder (!%p244_p9), %s470_s16, %s627_s21 }
  0x13   : > { %v282_v0 = vld [vmem:[%s872_s1 + $0x18] sm:$0xff]  ;;  %v689_v1 = vmov 0.0   ;;  %v281_v2 = vld [vmem:[%s872_s1 + $0x10] sm:$0xff]  ;;  %vm690_vm0 = vmmov 0   ;;  %s275_s17 = scalar_select %p274_p10, %s753_s5, 1  ;;  %v280_v5 = vld [vmem:[%s872_s1 + $0x8] sm:$0xff] }
  0x14   : > { %556 = vmatprep.subr.mxu0 %v689_v1  ;;  %564 = vmatprep.mubr.msk.f32.mxu0 %vm690_vm0, %v689_v1  ;;  %v372_v3 = vld [vmem:[%s874_s3 + $0x38] sm:$0xff]  ;;  %v371_v4 = vld [vmem:[%s874_s3 + $0x30] sm:$0xff]  ;;  %v370_v6 = vld [vmem:[%s874_s3 + $0x28] sm:$0xff]  ;;  %vm290_vm1 = vcmask 261120   ;;  %vm380_vm2 = vcmask 523264   ;;  %p629_p12 = pnand %p628_p11, %p770_p5  ;;  %s691_s5 = smov [#allocation4]  }
  0x15   : > { %557 = vmatpush3.msra.mxu0 %v282_v0  ;;  %567 = vmatprep.subr.mxu1 %v689_v1  ;;  %s533_s22 = sshll.u32 %s275_s17, 3  ;;  %v279_v7 = vld [vmem:[%s872_s1] sm:$0xff]  ;;  %v368_v10 = vld [vmem:[%s874_s3 + $0x18] sm:$0xff]  ;;  %v367_v11 = vld [vmem:[%s874_s3 + $0x10] sm:$0xff] }
  0x16   : > { %558 = vmatprep.subr.mxu0 %v689_v1  ;;  %568 = vmatpush3.msra.mxu1 %v372_v3  ;;  %s277_s13 = scalar_lea.vmem %s871_s0, %s533_s22  ;;  %v369_v9 = vld [vmem:[%s874_s3 + $0x20] sm:$0xff]  ;;  %v366_v12 = vld [vmem:[%s874_s3 + $0x8] sm:$0xff]  ;;  %p630_p13 = pneg %p629_p12 }
  0x17   : > { %559 = vmatpush3.msra.mxu0 %v281_v2  ;;  %569 = vmatprep.subr.mxu1 %v689_v1  ;;  %v278_v8 = vld [vmem:[%s277_s13] sm:$0xff]  ;;  %s631_s22 = sshll.u32 %s691_s5, 4  ;;  %s632_s22 = int_to_ptr.vmem [resolvable:$false] %s631_s22 }
  0x18   : > { %560 = vmatprep.subr.mxu0 %v689_v1  ;;  %570 = vmatpush3.msra.mxu1 %v371_v4  ;;  %v365_v13 = vld [vmem:[%s874_s3] sm:$0xff]  ;;  %s633_s23 = scalar_lea.vmem %s632_s22, 256  ;;  %p634_p0 = scmp.lt.s32.totalorder %s470_s16, %s632_s22 }
  0x19   : > { %561 = vmatpush3.msra.mxu0 %v280_v5  ;;  %571 = vmatprep.subr.mxu1 %v689_v1  ;;  %v534_v14 = vld [vmem:[%s873_s2] ss:$0 sm:$0xff]  ;;  %p635_p1 = scmp.lt.s32.totalorder %s633_s23, %s627_s21 }
  0x1a   : > { %562 = vmatprep.subr.mxu0 %v689_v1  ;;  %572 = vmatpush3.msra.mxu1 %v370_v6  ;;  %v536_v19 = vld [vmem:[%s875_s4] ss:$0 sm:$0xff] }
  0x1b   : > { %563 = vmatpush3.msra.mxu0 %v279_v7  ;;  %573 = vmatprep.subr.mxu1 %v689_v1  ;;  %p636_p2 = por %p635_p1, %p634_p0 }
  0x1c   : > { %565 = vmatmul.mubr.msk.f32.vlgmr.msra.gmra.mxu0 %vm290_vm1, %v278_v8  ;;  %574 = vmatpush3.msra.mxu1 %v369_v9 }
  0x1d   : > { %575 = vmatprep.subr.mxu1 %v689_v1  ;;  %583 = vmatprep.mubr.msk.f32.mxu1 %vm690_vm0, %v689_v1  ;;  %p637_p3 = pnand %p636_p2, %p630_p13 }
  0x1e   : > { %576 = vmatpush3.msra.mxu1 %v368_v10 }
  0x1f   : > { %577 = vmatprep.subr.mxu1 %v689_v1 }
  0x20   : > { %578 = vmatpush3.msra.mxu1 %v367_v11 }
  0x21   : > { %579 = vmatprep.subr.mxu1 %v689_v1 }
  0x22   : > { %580 = vmatpush3.msra.mxu1 %v366_v12 }
  0x23   : > { %581 = vmatprep.subr.mxu1 %v689_v1 }
  0x24   : > { %582 = vmatpush3.msra.mxu1 %v365_v13 }
  0xdc   : > { %v360_v15 = vpop.f32.mrf.mxu0 }
  0xdd   : > { %v361_v16 = vadd.f32 %v534_v14, %v360_v15 }
  0xde   : > { %v566_v17 = vpop.f32.mrf.mxu0 }
  0xdf   : > { %v364_v18 = vmax.f32 %v361_v16, 0.0 }
  0xe1   : > { %584 = vmatmul.mubr.msk.f32.vlgmr.msra.gmra.mxu1 %vm380_vm2, %v364_v18 }
 0x1a1   : > { %v450_v20 = vpop.f32.mrf.mxu1 }
 0x1a2   : > { %v451_v21 = vadd.f32 %v536_v19, %v450_v20 }
 0x1a3   : > { %v585_v22 = vpop.f32.mrf.mxu1 }
 0x1a4   : > { %454 = vst.msk [vmem:[%s273_s15] sm:$0xff] %vm290_vm1, %v451_v21 }
 0x1a5   : > { %640 = shalt.err (!%p637_p3)
}
 0x1a6   : > { %s641_s6 = scalar_lea.hbm %s835_s19, 128  ;;  %s645_s11 = scalar_lea.hbm %s877_s7, 256 }
 0x1a7   : > { %p642_p4 = scmp.ne.s32.totalorder %s835_s19, %s641_s6  ;;  %p646_p9 = scmp.lt.s32.totalorder %s835_s19, %s877_s7 }
 0x1a8   : > { %p647_p10 = scmp.lt.s32.totalorder %s645_s11, %s641_s6 }
 0x1a9   : > { %p643_p7 = pnand %p642_p4, %p770_p5 }
 0x1aa   : > { %p648_p11 = por %p647_p10, %p646_p9 }
 0x1ab   : > { %p644_p8 = pneg %p643_p7 }
 0x1ad   : > { %p649_p12 = pnand %p648_p11, %p644_p8 }
 0x1af   : > { %652 = shalt.err (!%p649_p12)
}
 0x1b0   : > { %586 = dma.vmem_to_hbm [thread:$0]  (%p770_p5), %s470_s16, 128, %s835_s19, %s456_s20  }
 0x1b1 PF: > { %p592_p13 = scmp.ge.s32.totalorder %s687_s27, 2  ;;  %s481_s14 = sand.u32 1, %s675_s24  }
 0x1b2   : > { %s482_s15 = scalar_lea.sflag [#allocation5], %s481_s14 }
 0x1b3   : > { %p589_p0 = pnand %p592_p13, %p774_p6 }
 0x1b5   : > { %p590_p1 = pneg %p589_p0 }
 0x1b7   : > { %670 = dma.done.wait (%p590_p1), %s482_s15, 128  }
 0x1b8   : > { %672 = vsyncadd (%p590_p1), %s482_s15, 4294967168  ;;  %p21_p2 = scmp.ge.s32.totalorder %s757_s28, 4   ;;  %s881_s24 = smov %s679_s25 }
 0x1b9   : > { %s882_s25 = smov %s683_s26  ;;  %s883_s26 = smov %s768_s8 }
 0x1ba   : > { %s884_s27 = smov %s757_s28  ;;  %23 = sbr.rel (!%p21_p2) target bundleno = 3 (0x3), region = 83 }
 0x1bf   :  { %487 = vsyncpa [#allocation5], 1 }
 0x1c0   :  { %489 = vsyncpa [#allocation5 + $0x1], 1 }

</bundles_post_ra>
